<compile_context>
chip_gen: v7x
topology: tpu7x:2x2x1
jax: 0.10.0
libtpu: 0.0.40
codegen_flags: <defaults>
</compile_context>

<pallas_src>
from typing import List, Optional

import jax
import jax.numpy as jnp
from jax.experimental import pallas as pl
from jax.experimental.pallas import tpu as pltpu

BN_EPS = 1e-5  # torch.nn.BatchNorm1d default eps


# ----------------------------- in-kernel helpers ----------------------------

def _lbn_relu(h, w_bf16, gamma, beta):
    """Linear(bias=False) -> BatchNorm1d(batch stats) -> ReLU.

    h: (B, Din) f32 (or bf16 for the first layer); w_bf16: (Din, Dout) bf16;
    gamma/beta: (1, Dout) f32.  MXU matmul in bf16 with f32 accumulation,
    single-pass BN epilogue in f32, rsqrt on the EUP slot.
    """
    hm = jnp.dot(h.astype(jnp.bfloat16), w_bf16, preferred_element_type=jnp.float32)
    mean = jnp.mean(hm, axis=0, keepdims=True)
    mean_sq = jnp.mean(hm * hm, axis=0, keepdims=True)
    var = mean_sq - mean * mean                      # biased variance, like torch BN
    scale = gamma * jax.lax.rsqrt(var + BN_EPS)
    shift = beta - mean * scale
    return jnp.maximum(hm * scale + shift, 0.0)


# ----------------------------- Pallas kernels ------------------------------

def _make_branch_kernel(n_layers: int):
    """Fused chain of n_layers Linear->BN->ReLU blocks for one branch (one grid point)."""
    def kernel(x_ref, *refs):
        out_ref = refs[-1]
        h = x_ref[...]                               # (B, D0) bf16
        for i in range(n_layers):
            w = refs[3 * i][...]                     # (Din, Dout) bf16
            g = refs[3 * i + 1][...]                 # (1, Dout) f32
            b = refs[3 * i + 2][...]                 # (1, Dout) f32
            h = _lbn_relu(h, w, g, b)
        out_ref[...] = h.astype(out_ref.dtype)
    return kernel


def _make_main_kernel(n_layers: int, scaling_factor: int):
    """Fused: branch combine + main chain + final Linear+bias."""
    def kernel(br_ref, *refs):
        out_ref = refs[-1]
        left = br_ref[0]                             # (B, hidden) f32
        right = br_ref[1]
        if scaling_factor == 2:
            # NOTE: matches torch semantics; with the default parameterization the first
            # main layer expects width `hidden`, so this path shape-errors in torch too.
            y = jnp.concatenate((left, right), axis=-1)
        else:
            y = left + right                         # free VPU op, hidden under the matmul
        for i in range(n_layers):
            w = refs[3 * i][...]
            g = refs[3 * i + 1][...]
            b = refs[3 * i + 2][...]
            y = _lbn_relu(y, w, g, b)
        fc_w = refs[3 * n_layers][...]               # (Dlast, num_classes) bf16
        fc_b = refs[3 * n_layers + 1][...]           # (1, num_classes) f32
        out_ref[...] = (
            jnp.dot(y.astype(jnp.bfloat16), fc_w, preferred_element_type=jnp.float32)
            + fc_b
        )
    return kernel


# ------------------------------ kernel wrappers ------------------------------

def run_branches(x_stacked_bf16, branch_layers):
    """x_stacked: (n_branch, B, D0) bf16; branch_layers: list of
    (w (n,Din,Dout) bf16, gamma (n,1,Dout) f32, beta (n,1,Dout) f32).
    Returns (n_branch, B, hidden) f32. Grid over branches -> both TCs on v7x."""
    n_branch, B, D0 = x_stacked_bf16.shape
    hidden = branch_layers[-1][0].shape[-1] if branch_layers else D0

    flat_args = [x_stacked_bf16]
    in_specs = [pl.BlockSpec((None, B, D0), lambda b: (b, 0, 0))]
    for w, g, bta in branch_layers:
        for arr in (w, g, bta):
            flat_args.append(arr)
            in_specs.append(
                pl.BlockSpec((None,) + arr.shape[1:], lambda b: (b, 0, 0)))

    return pl.pallas_call(
        _make_branch_kernel(len(branch_layers)),
        out_shape=jax.ShapeDtypeStruct((n_branch, B, hidden), jnp.float32),
        grid=(n_branch,),
        in_specs=in_specs,
        out_specs=pl.BlockSpec((None, B, hidden), lambda b: (b, 0, 0)),
        compiler_params=pltpu.CompilerParams(dimension_semantics=("parallel",)),
    )(*flat_args)


def run_main(br_stacked_f32, main_layers, fc_w_bf16, fc_b_f32, scaling_factor):
    """br_stacked: (2, B, hidden) f32. Fully fused combine + main chain + fc."""
    B = br_stacked_f32.shape[1]
    num_classes = fc_w_bf16.shape[-1]
    vm = pl.BlockSpec(memory_space=pltpu.MemorySpace.VMEM)

    flat_args = [br_stacked_f32]
    for w, g, bta in main_layers:
        flat_args += [w, g, bta]
    flat_args += [fc_w_bf16, fc_b_f32]

    return pl.pallas_call(
        _make_main_kernel(len(main_layers), scaling_factor),
        out_shape=jax.ShapeDtypeStruct((B, num_classes), jnp.float32),
        in_specs=[vm] * len(flat_args),
        out_specs=vm,
    )(*flat_args)


# --------------------------- parameters (glue) ------------------------------

def init_params(key, num_classes, input_channels, img_h, img_w,
                hidden_layers_dim: List[int]):
    dims = [input_channels * img_h * img_w] + list(hidden_layers_dim) + [num_classes]
    dims1 = dims[: len(dims) // 2]
    dims2 = dims[len(dims) // 2:]

    keys = jax.random.split(key, 64)
    ki = 0

    def linear_w(k, din, dout):
        bound = 1.0 / jnp.sqrt(jnp.float32(din))
        return jax.random.uniform(k, (din, dout), jnp.float32, -bound, bound)

    params = {"left": [], "right": [], "main": []}
    branch_pairs = list(zip(dims1[:-1], dims1[1:]))
    main_pairs = list(zip(dims2[:-2], dims2[1:-1]))
    for name, pairs in (("left", branch_pairs), ("right", branch_pairs),
                        ("main", main_pairs)):
        for din, dout in pairs:
            w = linear_w(keys[ki], din, dout); ki += 1
            gamma = jnp.ones((dout,), jnp.float32)   # BN weight init
            beta = jnp.zeros((dout,), jnp.float32)   # BN bias init
            params[name].append((w, gamma, beta))

    din, dout = dims[-2], dims[-1]
    fc_w = linear_w(keys[ki], din, dout); ki += 1
    bound = 1.0 / jnp.sqrt(jnp.float32(din))
    fc_b = jax.random.uniform(keys[ki], (dout,), jnp.float32, -bound, bound); ki += 1
    params["fc"] = (fc_w, fc_b)
    params["hidden_dim"] = dims2[0]
    return params


def prepare_kernel_params(params):
    """Stack left/right weights on a leading branch axis and pre-cast matmul
    operands to bf16 (halves weight DMA bytes; f32 accumulation in-kernel)."""
    branch_layers = []
    for (wl, gl, bl), (wr, gr, br_) in zip(params["left"], params["right"]):
        w = jnp.stack((wl, wr)).astype(jnp.bfloat16)              # (2, Din, Dout)
        g = jnp.stack((gl, gr)).reshape(2, 1, -1)                 # (2, 1, Dout) f32
        b = jnp.stack((bl, br_)).reshape(2, 1, -1)
        branch_layers.append((w, g, b))
    main_layers = [(w.astype(jnp.bfloat16), g.reshape(1, -1), b.reshape(1, -1))
                   for (w, g, b) in params["main"]]
    fc_w, fc_b = params["fc"]
    return {
        "branch_layers": branch_layers,
        "main_layers": main_layers,
        "fc_w": fc_w.astype(jnp.bfloat16),
        "fc_b": fc_b.reshape(1, -1),
    }


# ------------------------------- forward ------------------------------------

def mm_mlp_forward(params, kparams, x1, x2, *, scaling_factor: int = 1,
                   eps: float = 1e-5,
                   left_branch_intervention: Optional[str] = None,
                   right_branch_intervention: Optional[str] = None,
                   enable_left_branch: bool = True,
                   enable_right_branch: bool = True,
                   rng: Optional[jax.Array] = None):
    assert left_branch_intervention is None or right_branch_intervention is None, \
        "At least one branchnet should be left intact"
    assert enable_left_branch or enable_right_branch, \
        "At least one branchnet should be enabled"

    B = x1.shape[0]
    x1 = x1.reshape(B, -1).astype(jnp.float32)
    x2 = x2.reshape(B, -1).astype(jnp.float32)
    hidden_dim = params["hidden_dim"]

    if rng is None:
        rng = jax.random.PRNGKey(0)
    k1, k2 = jax.random.split(rng)

    def preprocess(x, intervention, key):
        if intervention == "occlusion":
            # TODO(synk): torch.randn RNG stream not reproduced; jax.random used instead.
            return jax.random.normal(key, x.shape, x.dtype) * eps
        if intervention == "deactivation":
            return jnp.zeros_like(x)
        return x

    def disabled_output(intervention, key):
        if intervention == "occlusion":
            return jax.random.normal(key, (B, hidden_dim), jnp.float32) * eps
        if intervention == "deactivation":
            return jnp.zeros((B, hidden_dim), jnp.float32)
        raise ValueError("Invalid branch intervention")

    blayers = kparams["branch_layers"]

    if enable_left_branch and enable_right_branch:
        x1p = preprocess(x1, left_branch_intervention, k1)
        x2p = preprocess(x2, right_branch_intervention, k2)
        xs = jnp.stack((x1p, x2p)).astype(jnp.bfloat16)           # (2, B, D0)
        br = run_branches(xs, blayers)                            # (2, B, hidden)
    elif enable_left_branch:
        x1p = preprocess(x1, left_branch_intervention, k1)
        layers_l = [tuple(a[0:1] for a in layer) for layer in blayers]
        br_l = run_branches(x1p[None].astype(jnp.bfloat16), layers_l)[0]
        br_r = disabled_output(right_branch_intervention, k2)
        br = jnp.stack((br_l, br_r))
    else:
        x2p = preprocess(x2, right_branch_intervention, k2)
        layers_r = [tuple(a[1:2] for a in layer) for layer in blayers]
        br_r = run_branches(x2p[None].astype(jnp.bfloat16), layers_r)[0]
        br_l = disabled_output(left_branch_intervention, k1)
        br = jnp.stack((br_l, br_r))

    return run_main(br, kparams["main_layers"], kparams["fc_w"], kparams["fc_b"],
                    scaling_factor)


# --------------------------- pure-JAX reference ------------------------------

def _ref_forward(params, x1, x2):
    def lbn(x, w, g, b):
        h = x @ w
        m = h.mean(0, keepdims=True)
        v = ((h - m) ** 2).mean(0, keepdims=True)
        return jnp.maximum((h - m) / jnp.sqrt(v + BN_EPS) * g + b, 0.0)

    B = x1.shape[0]
    a, c = x1.reshape(B, -1), x2.reshape(B, -1)
    for w, g, b in params["left"]:
        a = lbn(a, w, g, b)
    for w, g, b in params["right"]:
        c = lbn(c, w, g, b)
    y = a + c
    for w, g, b in params["main"]:
        y = lbn(y, w, g, b)
    fc_w, fc_b = params["fc"]
    return y @ fc_w + fc_b


# --------------------------------- main --------------------------------------

if __name__ == "__main__":
    key = jax.random.PRNGKey(0)
    kp, kx1, kx2 = jax.random.split(key, 3)

    B, C, H, W = 8, 4, 16, 16
    num_classes = 10
    hidden_layers_dim = [64, 64, 32]  # full chain: [1024, 64 | 64, 32, 10]

    params = init_params(kp, num_classes, C, H, W, hidden_layers_dim)
    kparams = prepare_kernel_params(params)

    x1 = jax.random.normal(kx1, (B, C, H, W), jnp.float32)
    x2 = jax.random.normal(kx2, (B, C, H, W), jnp.float32)

    @jax.jit
    def fwd(a, b):
        return mm_mlp_forward(params, kparams, a, b, scaling_factor=1)

    out = jax.block_until_ready(fwd(x1, x2))

    ref = _ref_forward(params, x1, x2)
    assert out.shape == (B, num_classes), out.shape
    # bf16 MXU inputs (f32 accumulation) vs f32 reference -> loosened tolerance.
    assert jnp.allclose(out, ref, atol=2e-2, rtol=2e-2), \
        float(jnp.max(jnp.abs(out - ref)))

    print("KERNEL_OK")
</pallas_src>

<mosaic_0001>
module attributes {stable_mosaic.version = 11 : i64} {
  func.func @kernel(%arg0: i32, %arg1: memref<1x8x1024xbf16, #tpu.memory_space<vmem>>, %arg2: memref<1x1024x64xbf16, #tpu.memory_space<vmem>>, %arg3: memref<1x1x64xf32, #tpu.memory_space<vmem>>, %arg4: memref<1x1x64xf32, #tpu.memory_space<vmem>>, %arg5: memref<1x8x64xf32, #tpu.memory_space<vmem>>) attributes {dimension_semantics = [#tpu.dimension_semantics<parallel>], iteration_bounds = array<i64: 2>, scalar_prefetch = 0 : i64, scratch_operands = 0 : i64, tpu.core_type = #tpu.core_type<tc>, window_params = [{transform_indices = @transform_0, window_bounds = array<i64: 1, 8, 1024>}, {transform_indices = @transform_1, window_bounds = array<i64: 1, 1024, 64>}, {transform_indices = @transform_2, window_bounds = array<i64: 1, 1, 64>}, {transform_indices = @transform_3, window_bounds = array<i64: 1, 1, 64>}, {transform_indices = @transform_4, window_bounds = array<i64: 1, 8, 64>}]} {
    %c0 = arith.constant 0 : index
    %c0_0 = arith.constant 0 : index
    %c0_1 = arith.constant 0 : index
    %0 = vector.load %arg1[%c0, %c0_0, %c0_1] : memref<1x8x1024xbf16, #tpu.memory_space<vmem>>, vector<1x8x1024xbf16>
    %1 = vector.shape_cast %0 : vector<1x8x1024xbf16> to vector<8x1024xbf16>
    %c0_2 = arith.constant 0 : index
    %c0_3 = arith.constant 0 : index
    %c0_4 = arith.constant 0 : index
    %2 = vector.load %arg2[%c0_2, %c0_3, %c0_4] : memref<1x1024x64xbf16, #tpu.memory_space<vmem>>, vector<1x1024x64xbf16>
    %3 = vector.shape_cast %2 : vector<1x1024x64xbf16> to vector<1024x64xbf16>
    %c0_5 = arith.constant 0 : index
    %c0_6 = arith.constant 0 : index
    %c0_7 = arith.constant 0 : index
    %4 = vector.load %arg3[%c0_5, %c0_6, %c0_7] : memref<1x1x64xf32, #tpu.memory_space<vmem>>, vector<1x1x64xf32>
    %5 = vector.shape_cast %4 : vector<1x1x64xf32> to vector<1x64xf32>
    %c0_8 = arith.constant 0 : index
    %c0_9 = arith.constant 0 : index
    %c0_10 = arith.constant 0 : index
    %6 = vector.load %arg4[%c0_8, %c0_9, %c0_10] : memref<1x1x64xf32, #tpu.memory_space<vmem>>, vector<1x1x64xf32>
    %7 = vector.shape_cast %6 : vector<1x1x64xf32> to vector<1x64xf32>
    %cst = arith.constant dense<0.000000e+00> : vector<8x64xf32>
    %8 = tpu.matmul %1, %3, %cst {dimension_numbers = #tpu.dot_dimension_numbers<[1], [0], [0], [1], [0, 0, 1, 1], [], []>} : vector<8x1024xbf16>, vector<1024x64xbf16>, vector<8x64xf32> -> vector<8x64xf32>
    %cst_11 = arith.constant dense<0.000000e+00> : vector<64xf32>
    %9 = vector.multi_reduction <add>, %8, %cst_11 [0] : vector<8x64xf32> to vector<64xf32>
    %10 = vector.shape_cast %9 : vector<64xf32> to vector<1x64xf32>
    %cst_12 = arith.constant 8.000000e+00 : f32
    %11 = vector.broadcast %cst_12 : f32 to vector<1x64xf32>
    %12 = arith.divf %10, %11 : vector<1x64xf32>
    %13 = arith.mulf %8, %8 : vector<8x64xf32>
    %cst_13 = arith.constant dense<0.000000e+00> : vector<64xf32>
    %14 = vector.multi_reduction <add>, %13, %cst_13 [0] : vector<8x64xf32> to vector<64xf32>
    %15 = vector.shape_cast %14 : vector<64xf32> to vector<1x64xf32>
    %cst_14 = arith.constant 8.000000e+00 : f32
    %16 = vector.broadcast %cst_14 : f32 to vector<1x64xf32>
    %17 = arith.divf %15, %16 : vector<1x64xf32>
    %18 = arith.mulf %12, %12 : vector<1x64xf32>
    %19 = arith.subf %17, %18 : vector<1x64xf32>
    %cst_15 = arith.constant 9.99999974E-6 : f32
    %20 = vector.broadcast %cst_15 : f32 to vector<1x64xf32>
    %21 = arith.addf %19, %20 : vector<1x64xf32>
    %22 = math.rsqrt %21 : vector<1x64xf32>
    %23 = arith.mulf %5, %22 : vector<1x64xf32>
    %24 = arith.mulf %12, %23 : vector<1x64xf32>
    %25 = arith.subf %7, %24 : vector<1x64xf32>
    %26 = vector.broadcast %23 : vector<1x64xf32> to vector<8x64xf32>
    %27 = arith.mulf %8, %26 : vector<8x64xf32>
    %28 = vector.broadcast %25 : vector<1x64xf32> to vector<8x64xf32>
    %29 = arith.addf %27, %28 : vector<8x64xf32>
    %cst_16 = arith.constant 0.000000e+00 : f32
    %30 = vector.broadcast %cst_16 : f32 to vector<8x64xf32>
    %31 = arith.maximumf %29, %30 : vector<8x64xf32>
    %c0_17 = arith.constant 0 : index
    %c0_18 = arith.constant 0 : index
    %c0_19 = arith.constant 0 : index
    %32 = vector.load %arg5[%c0_17, %c0_18, %c0_19] : memref<1x8x64xf32, #tpu.memory_space<vmem>>, vector<1x8x64xf32>
    %33 = vector.shape_cast %32 : vector<1x8x64xf32> to vector<8x64xf32>
    %34 = vector.shape_cast %31 : vector<8x64xf32> to vector<1x8x64xf32>
    tpu.vector_store %arg5[%c0_17, %c0_18, %c0_19], %34 {strides = array<i32>} : memref<1x8x64xf32, #tpu.memory_space<vmem>>, vector<1x8x64xf32>,
    return
  }
  func.func @transform_0(%arg0: i32) -> (i32, i32, i32) {
    %c0_i32 = arith.constant 0 : i32
    %c0_i32_0 = arith.constant 0 : i32
    %c0_i32_1 = arith.constant 0 : i32
    return %arg0, %c0_i32, %c0_i32_0 : i32, i32, i32
  }
  func.func @transform_1(%arg0: i32) -> (i32, i32, i32) {
    %c0_i32 = arith.constant 0 : i32
    %c0_i32_0 = arith.constant 0 : i32
    %c0_i32_1 = arith.constant 0 : i32
    return %arg0, %c0_i32, %c0_i32_0 : i32, i32, i32
  }
  func.func @transform_2(%arg0: i32) -> (i32, i32, i32) {
    %c0_i32 = arith.constant 0 : i32
    %c0_i32_0 = arith.constant 0 : i32
    %c0_i32_1 = arith.constant 0 : i32
    return %arg0, %c0_i32, %c0_i32_0 : i32, i32, i32
  }
  func.func @transform_3(%arg0: i32) -> (i32, i32, i32) {
    %c0_i32 = arith.constant 0 : i32
    %c0_i32_0 = arith.constant 0 : i32
    %c0_i32_1 = arith.constant 0 : i32
    return %arg0, %c0_i32, %c0_i32_0 : i32, i32, i32
  }
  func.func @transform_4(%arg0: i32) -> (i32, i32, i32) {
    %c0_i32 = arith.constant 0 : i32
    %c0_i32_0 = arith.constant 0 : i32
    %c0_i32_1 = arith.constant 0 : i32
    return %arg0, %c0_i32, %c0_i32_0 : i32, i32, i32
  }
}

module attributes {stable_mosaic.version = 11 : i64} {
  func.func @kernel(%arg0: memref<2x8x64xf32, #tpu.memory_space<vmem>>, %arg1: memref<64x32xbf16, #tpu.memory_space<vmem>>, %arg2: memref<1x32xf32, #tpu.memory_space<vmem>>, %arg3: memref<1x32xf32, #tpu.memory_space<vmem>>, %arg4: memref<32x10xbf16, #tpu.memory_space<vmem>>, %arg5: memref<1x10xf32, #tpu.memory_space<vmem>>, %arg6: memref<8x10xf32, #tpu.memory_space<vmem>>) attributes {dimension_semantics = [], scalar_prefetch = 0 : i64, scratch_operands = 0 : i64, tpu.core_type = #tpu.core_type<tc>} {
    %c0 = arith.constant 0 : index
    %c0_0 = arith.constant 0 : index
    %c0_1 = arith.constant 0 : index
    %0 = vector.load %arg0[%c0, %c0_0, %c0_1] : memref<2x8x64xf32, #tpu.memory_space<vmem>>, vector<1x8x64xf32>
    %1 = vector.shape_cast %0 : vector<1x8x64xf32> to vector<8x64xf32>
    %c1 = arith.constant 1 : index
    %c0_2 = arith.constant 0 : index
    %c0_3 = arith.constant 0 : index
    %2 = vector.load %arg0[%c1, %c0_2, %c0_3] : memref<2x8x64xf32, #tpu.memory_space<vmem>>, vector<1x8x64xf32>
    %3 = vector.shape_cast %2 : vector<1x8x64xf32> to vector<8x64xf32>
    %4 = arith.addf %1, %3 : vector<8x64xf32>
    %c0_4 = arith.constant 0 : index
    %c0_5 = arith.constant 0 : index
    %5 = vector.load %arg1[%c0_4, %c0_5] : memref<64x32xbf16, #tpu.memory_space<vmem>>, vector<64x32xbf16>
    %c0_6 = arith.constant 0 : index
    %c0_7 = arith.constant 0 : index
    %6 = vector.load %arg2[%c0_6, %c0_7] : memref<1x32xf32, #tpu.memory_space<vmem>>, vector<1x32xf32>
    %c0_8 = arith.constant 0 : index
    %c0_9 = arith.constant 0 : index
    %7 = vector.load %arg3[%c0_8, %c0_9] : memref<1x32xf32, #tpu.memory_space<vmem>>, vector<1x32xf32>
    %8 = arith.truncf %4 : vector<8x64xf32> to vector<8x64xbf16>
    %cst = arith.constant dense<0.000000e+00> : vector<8x32xf32>
    %9 = tpu.matmul %8, %5, %cst {dimension_numbers = #tpu.dot_dimension_numbers<[1], [0], [0], [1], [0, 0, 1, 1], [], []>} : vector<8x64xbf16>, vector<64x32xbf16>, vector<8x32xf32> -> vector<8x32xf32>
    %cst_10 = arith.constant dense<0.000000e+00> : vector<32xf32>
    %10 = vector.multi_reduction <add>, %9, %cst_10 [0] : vector<8x32xf32> to vector<32xf32>
    %11 = vector.shape_cast %10 : vector<32xf32> to vector<1x32xf32>
    %cst_11 = arith.constant 8.000000e+00 : f32
    %12 = vector.broadcast %cst_11 : f32 to vector<1x32xf32>
    %13 = arith.divf %11, %12 : vector<1x32xf32>
    %14 = arith.mulf %9, %9 : vector<8x32xf32>
    %cst_12 = arith.constant dense<0.000000e+00> : vector<32xf32>
    %15 = vector.multi_reduction <add>, %14, %cst_12 [0] : vector<8x32xf32> to vector<32xf32>
    %16 = vector.shape_cast %15 : vector<32xf32> to vector<1x32xf32>
    %cst_13 = arith.constant 8.000000e+00 : f32
    %17 = vector.broadcast %cst_13 : f32 to vector<1x32xf32>
    %18 = arith.divf %16, %17 : vector<1x32xf32>
    %19 = arith.mulf %13, %13 : vector<1x32xf32>
    %20 = arith.subf %18, %19 : vector<1x32xf32>
    %cst_14 = arith.constant 9.99999974E-6 : f32
    %21 = vector.broadcast %cst_14 : f32 to vector<1x32xf32>
    %22 = arith.addf %20, %21 : vector<1x32xf32>
    %23 = math.rsqrt %22 : vector<1x32xf32>
    %24 = arith.mulf %6, %23 : vector<1x32xf32>
    %25 = arith.mulf %13, %24 : vector<1x32xf32>
    %26 = arith.subf %7, %25 : vector<1x32xf32>
    %27 = vector.broadcast %24 : vector<1x32xf32> to vector<8x32xf32>
    %28 = arith.mulf %9, %27 : vector<8x32xf32>
    %29 = vector.broadcast %26 : vector<1x32xf32> to vector<8x32xf32>
    %30 = arith.addf %28, %29 : vector<8x32xf32>
    %cst_15 = arith.constant 0.000000e+00 : f32
    %31 = vector.broadcast %cst_15 : f32 to vector<8x32xf32>
    %32 = arith.maximumf %30, %31 : vector<8x32xf32>
    %c0_16 = arith.constant 0 : index
    %c0_17 = arith.constant 0 : index
    %33 = vector.load %arg4[%c0_16, %c0_17] : memref<32x10xbf16, #tpu.memory_space<vmem>>, vector<32x10xbf16>
    %c0_18 = arith.constant 0 : index
    %c0_19 = arith.constant 0 : index
    %34 = vector.load %arg5[%c0_18, %c0_19] : memref<1x10xf32, #tpu.memory_space<vmem>>, vector<1x10xf32>
    %35 = arith.truncf %32 : vector<8x32xf32> to vector<8x32xbf16>
    %cst_20 = arith.constant dense<0.000000e+00> : vector<8x10xf32>
    %36 = tpu.matmul %35, %33, %cst_20 {dimension_numbers = #tpu.dot_dimension_numbers<[1], [0], [0], [1], [0, 0, 1, 1], [], []>} : vector<8x32xbf16>, vector<32x10xbf16>, vector<8x10xf32> -> vector<8x10xf32>
    %37 = vector.broadcast %34 : vector<1x10xf32> to vector<8x10xf32>
    %38 = arith.addf %36, %37 : vector<8x10xf32>
    %c0_21 = arith.constant 0 : index
    %c0_22 = arith.constant 0 : index
    %39 = vector.load %arg6[%c0_21, %c0_22] : memref<8x10xf32, #tpu.memory_space<vmem>>, vector<8x10xf32>
    tpu.vector_store %arg6[%c0_21, %c0_22], %38 {strides = array<i32>} : memref<8x10xf32, #tpu.memory_space<vmem>>, vector<8x10xf32>,
    return
  }
}

</mosaic_0001>

<bundles_post_ra>
// kernel: fwd.3
= control target key start
LH: loop header
LB: loop body
LE: loop exit
PB: predicated region body
PF: predicated region fallthrough
CT: control target
= control target key end

     0   :  { %v305_v1 = vmov 0.0   ;;  %vm306_vm0 = vmmov 0   ;;  %s391_s0 = inlined_call_operand.vmem [shape: f32[2,8,64], index: 0, kind: input, shape index: {}]   ;;  %s392_s1 = inlined_call_operand.vmem [shape: bf16[64,32], index: 1, kind: input, shape index: {}]   ;;  %s393_s2 = inlined_call_operand.vmem [shape: f32[1,32], index: 2, kind: input, shape index: {}]   ;;  %s394_s3 = inlined_call_operand.vmem [shape: f32[1,32], index: 3, kind: input, shape index: {}]   ;;  %s395_s4 = inlined_call_operand.vmem [shape: bf16[32,10], index: 4, kind: input, shape index: {}]   ;;  %s396_s5 = inlined_call_operand.vmem [shape: f32[1,10], index: 5, kind: input, shape index: {}]   ;;  %s397_s6 = inlined_call_operand.hbm [shape: f32[8,10], index: 6, kind: output, shape index: {}]  }
   0x1   :  { %v273_v0 = vld [vmem:[%s392_s1] sm:$0xff]   ;;  %250 = vmatprep.subr.bf16.mxu0 %v305_v1  ;;  %262 = vmatprep.subr.bf16.mxu1 %v305_v1  ;;  %v274_v2 = vld [vmem:[%s392_s1 + $0x8] sm:$0xff]   ;;  %v275_v3 = vld [vmem:[%s392_s1 + $0x10] sm:$0xff]  }
   0x2   :  { %251 = vmatpush3.bf16.msra.mxu0 %v273_v0  ;;  %258 = vmatprep.mubr.msk.bf16.mxu0 %vm306_vm0, %v305_v1  ;;  %v25_v4 = vld [vmem:[%s391_s0] sm:$0xff]  ;;  %v232_v5 = vld [vmem:[%s391_s0 + $0x8] sm:$0xff] }
   0x3   :  { %252 = vmatprep.subr.bf16.mxu0 %v305_v1  ;;  %266 = vmatprep.mubr.msk.bf16.mxu1 %vm306_vm0, %v305_v1 }
   0x6   :  { %253 = vmatpush3.bf16.msra.mxu0 %v274_v2 }
   0x7   :  { %11 = vsyncpa [#allocation3], 0  ;;  %254 = vmatprep.subr.bf16.mxu0 %v305_v1  ;;  %v28_v6 = vadd.f32 %v232_v5, %v25_v4  ;;  %v276_v7 = vld [vmem:[%s392_s1 + $0x18] sm:$0xff]   ;;  %vm64_vm1 = vcmask 523264   ;;  %v277_v9 = vld [vmem:[%s395_s4] sm:$0xff]   ;;  %vm108_vm2 = vcmask 261120   ;;  %v135_v35 = vlaneseq }
   0x8   :  { %263 = vmatpush3.bf16.msra.mxu1 %v277_v9  ;;  %v278_v10 = vld [vmem:[%s395_s4 + $0x8] sm:$0xff]   ;;  %v37_v37 = vld [vmem:[%s393_s2] sm:$0x1]  ;;  %s307_s2 = smov [#allocation2]   ;;  %vm216_vm3 = vcmask 80896  }
   0x9   :  { %v39_v8 = vpack.c.bf16 %v28_v6, %v28_v6  ;;  %264 = vmatprep.subr.bf16.mxu1 %v305_v1  ;;  %v136_v36 = vshrl.u32 %v135_v35, 7  ;;  %v38_v41 = vld [vmem:[%s394_s3] sm:$0x1]  ;;  %s224_s16 = sshll.u32 %s307_s2, 4  ;;  %s225_s16 = int_to_ptr.vmem [resolvable:$true] %s224_s16 }
   0xa   :  { %255 = vmatpush3.bf16.msra.mxu0 %v275_v3  ;;  %v238_v50 = vld [vmem:[%s396_s5] ss:$0 sm:$0xff]  ;;  %s281_s3 = scalar_lea.vmem %s225_s16, 128  ;;  %p286_p1 = scmp.lt.s32.totalorder %s225_s16, %s225_s16 }
   0xb   :  { %256 = vmatprep.subr.bf16.mxu0 %v305_v1  ;;  %v137_v38 = vsub.s32 0, %v136_v36  ;;  %p282_p0 = scmp.ne.s32.totalorder %s225_s16, %s281_s3  ;;  %p287_p2 = scmp.lt.s32.totalorder %s281_s3, %s281_s3 }
   0xc   :  { %265 = vmatpush3.bf16.msra.mxu1 %v278_v10 }
   0xd   :  { %p288_p3 = por %p287_p2, %p286_p1 }
   0xe   :  { %257 = vmatpush3.bf16.msra.mxu0 %v276_v7 }
   0xf   :  { %p289_p4 = pnand %p288_p3, %p282_p0 }
  0x11   :  { %259 = vmatmul.mubr.msk.bf16.vlgmr.msra.gmra.mrb[0].mxu0 %vm64_vm1, %v39_v8 }
  0xe4   :  { %v102_v11 = vpop.f32.mrb[0].mxu0 }
  0xe5   :  { %v109_v12 = vsel %vm108_vm2, %v102_v11, 0.0  ;;  %v118_v13 = vmul.f32 %v102_v11, %v102_v11  ;;  %v260_v14 = vpop.f32.mrb[1].mxu0 }
  0xe6   :  { %v110_v15 = vrot.slane %v109_v12, 4  ;;  %v105_v16 = vpop.f32.mrb[2].mxu0 }
  0xe7   :  { %v119_v17 = vsel %vm108_vm2, %v118_v13, 0.0  ;;  %v261_v18 = vpop.f32.mrb[3].mxu0 }
  0xe8   :  { %v111_v19 = vadd.f32 %v110_v15, %v109_v12  ;;  %v120_v20 = vrot.slane %v119_v17, 4 }
  0xea   :  { %v112_v21 = vrot.slane %v111_v19, 2  ;;  %v121_v22 = vadd.f32 %v120_v20, %v119_v17 }
  0xec   :  { %v113_v23 = vadd.f32 %v112_v21, %v111_v19  ;;  %v122_v24 = vrot.slane %v121_v22, 2 }
  0xee   :  { %v114_v25 = vrot.slane %v113_v23, 1  ;;  %v123_v26 = vadd.f32 %v122_v24, %v121_v22 }
  0xf0   :  { %v115_v27 = vadd.f32 %v114_v25, %v113_v23  ;;  %v124_v28 = vrot.slane %v123_v26, 1 }
  0xf2   :  { %v117_v29 = vmul.f32 0.125, %v115_v27  ;;  %v125_v30 = vadd.f32 %v124_v28, %v123_v26 }
  0xf4   :  { %v126_v31 = vmul.f32 0.125, %v125_v30  ;;  %v127_v32 = vmul.f32 %v117_v29, %v117_v29 }
  0xf6   :  { %v128_v33 = vsub.f32 %v126_v31, %v127_v32 }
  0xf8   :  { %v129_v34 = vadd.f32 1e-05, %v128_v33 }
  0xfa   :  { %279 = vrsqrt.f32 %v129_v34 }
 0x104   :  { %v280_v39 = vpop.eup %279 }
 0x105   :  { %v131_v40 = vmul.f32 %v280_v39, %v37_v37 }
 0x107   :  { %v132_v42 = vmul.f32 %v131_v40, %v117_v29  ;;  %v138_v43 = vrot.slane %v131_v40, %v137_v38 }
 0x109   :  { %v133_v44 = vsub.f32 %v38_v41, %v132_v42  ;;  %v140_v45 = vmul.f32 %v138_v43, %v102_v11 }
 0x10b   :  { %v145_v46 = vrot.slane %v133_v44, %v137_v38 }
 0x10d   :  { %v147_v47 = vadd.f32 %v145_v46, %v140_v45 }
 0x10f   :  { %v148_v48 = vmax.f32 %v147_v47, 0.0 }
 0x111   :  { %v154_v49 = vpack.c.bf16 %v148_v48, %v148_v48 }
 0x113   :  { %267 = vmatmul.mubr.msk.bf16.vlgmr.msra.gmra.mrb[0].mxu1 %vm108_vm2, %v154_v49 }
 0x1e6   :  { %v210_v51 = vpop.f32.mrb[0].mxu1 }
 0x1e7   :  { %v211_v52 = vadd.f32 %v238_v50, %v210_v51  ;;  %v268_v53 = vpop.f32.mrb[1].mxu1 }
 0x1e8   :  { %v213_v54 = vpop.f32.mrb[2].mxu1 }
 0x1e9   :  { %v269_v55 = vpop.f32.mrb[3].mxu1  ;;  %217 = vst.msk [vmem:[#allocation2] sm:$0xff] %vm216_vm3, %v211_v52 }
 0x1ea   :  { %292 = shalt.err (!%p289_p4)
}
 0x1eb   :  { %s293_s5 = scalar_lea.hbm %s397_s6, 128 }
 0x1ec   :  { %p294_p5 = scmp.ne.s32.totalorder %s397_s6, %s293_s5  ;;  %p297_p6 = scmp.lt.u32.totalorder %s293_s5, %s397_s6 }
 0x1ee   :  { %p299_p7 = pnand %p297_p6, %p294_p5 }
 0x1f0   :  { %302 = shalt.err (!%p299_p7)
}
 0x1f1   :  { %227 = dma.vmem_to_hbm [thread:$0]  %s225_s16, 128, %s397_s6, [#allocation3]  }
 0x1f2   :  { %303 = dma.done.wait [#allocation3], 128  }
 0x1f3   :  { %304 = vsyncadd [#allocation3], 4294967168 }
 0x1f4   :  { %231 = vsyncpa [#allocation3], 1 }

// kernel: fwd.2
= control target key start
LH: loop header
LB: loop body
LE: loop exit
PB: predicated region body
PF: predicated region fallthrough
CT: control target
= control target key end

     0   :  { %s1365_s15 = smov 0   ;;  %s1473_s0 = inlined_call_operand.vmem [shape: bf16[2,8,1024], index: 0, kind: input, shape index: {}]   ;;  %s1474_s1 = inlined_call_operand.vmem [shape: bf16[2,1024,64], index: 1, kind: input, shape index: {}]   ;;  %s1475_s2 = inlined_call_operand.vmem [shape: f32[2,1,64], index: 2, kind: input, shape index: {}]   ;;  %s1476_s3 = inlined_call_operand.vmem [shape: f32[2,1,64], index: 3, kind: input, shape index: {}]   ;;  %s1477_s4 = inlined_call_operand.vmem [shape: f32[2,8,64], index: 4, kind: output, shape index: {}]  }
   0x1 LB: > { %s1076_s16 = sadd.s32 4294967295, %s1338_s15   ;;  %p1080_p0 = scmp.ge.s32.totalorder %s1338_s15, 1  ;;  %s1338_s15 = sphi %s1365_s15, %s14_s15  }
   0x2   : > { %p188_p1 = scmp.lt.s32.totalorder %s1338_s15, 3 }
   0x4   : > { %p189_p2 = pnand %p1080_p0, %p188_p1 }
   0x5   : > { %p224_p3 = scmp.lt.s32.totalorder (!%p189_p2), %s1076_s16, 1  ;;  %vm951_vm0 = vcmask (!%p189_p2), 523264  }
   0x6   : > { %192 = sbr.rel (%p189_p2) target bundleno = 346 (0x15a), region = 36 }
   0xd   : > { %s1479_s16 = smov (!%p224_p3, %s1076_s16), 1 }
   0xe   : > { %s1161_s17 = sshll.u32 %s1479_s16, 9  ;;  %s1160_s21 = sshll.u32 %s1479_s16, 5 }
   0xf   : > { %s1379_s20 = scalar_lea.vmem %s1474_s1, %s1161_s17  ;;  %s1415_s24 = scalar_lea.vmem %s1473_s0, %s1160_s21 }
  0x10   : > { %v1258_v0 = vld [vmem:[%s1379_s20 + $0x40] sm:$0xff]   ;;  %v1262_v4 = vld [vmem:[%s1379_s20 + $0x48] sm:$0xff]   ;;  %v1266_v8 = vld [vmem:[%s1379_s20 + $0x50] sm:$0xff]   ;;  %s236_s27 = scalar_lea.vmem %s1475_s2, %s1479_s16  ;;  %s239_s30 = scalar_lea.vmem %s1476_s3, %s1479_s16 }
  0x11   : > { %v1259_v1 = vld [vmem:[%s1379_s20 + $0xc0] sm:$0xff]   ;;  %1162 = vmatprep.subr.bf16.mxu0 %v1258_v0  ;;  %v1263_v5 = vld [vmem:[%s1379_s20 + $0xc8] sm:$0xff]   ;;  %v1267_v9 = vld [vmem:[%s1379_s20 + $0xd0] sm:$0xff]   ;;  %s1085_s5 = sshll.u32 %s1479_s16, 3 }
  0x12   : > { %v1260_v2 = vld [vmem:[%s1379_s20] sm:$0xff]   ;;  %1184 = vmatprep.subr.bf16.mxu1 %v1259_v1  ;;  %v1264_v6 = vld [vmem:[%s1379_s20 + $0x8] sm:$0xff]   ;;  %v1268_v10 = vld [vmem:[%s1379_s20 + $0x10] sm:$0xff]   ;;  %s243_s8 = scalar_lea.vmem %s1477_s4, %s1085_s5 }
  0x13   : > { %v1261_v3 = vld [vmem:[%s1379_s20 + $0x80] sm:$0xff]   ;;  %1163 = vmatpush3.bf16.msra.mxu0 %v1260_v2  ;;  %v1265_v7 = vld [vmem:[%s1379_s20 + $0x88] sm:$0xff]   ;;  %v1269_v11 = vld [vmem:[%s1379_s20 + $0x90] sm:$0xff]  }
  0x14   : > { %1185 = vmatpush3.bf16.msra.mxu1 %v1261_v3  ;;  %1164 = vmatprep.subr.bf16.mxu0 %v1262_v4  ;;  %v1270_v12 = vld [vmem:[%s1379_s20 + $0x58] sm:$0xff]   ;;  %v1274_v16 = vld [vmem:[%s1379_s20 + $0x60] sm:$0xff]   ;;  %v1278_v20 = vld [vmem:[%s1379_s20 + $0x68] sm:$0xff]  }
  0x15   : > { %1186 = vmatprep.subr.bf16.mxu1 %v1263_v5  ;;  %v1271_v13 = vld [vmem:[%s1379_s20 + $0xd8] sm:$0xff]   ;;  %v1275_v17 = vld [vmem:[%s1379_s20 + $0xe0] sm:$0xff]   ;;  %v1279_v21 = vld [vmem:[%s1379_s20 + $0xe8] sm:$0xff]  }
  0x16   : > { %v1272_v14 = vld [vmem:[%s1379_s20 + $0x18] sm:$0xff]   ;;  %v1276_v18 = vld [vmem:[%s1379_s20 + $0x20] sm:$0xff]   ;;  %v1280_v22 = vld [vmem:[%s1379_s20 + $0x28] sm:$0xff]  }
  0x17   : > { %1165 = vmatpush3.bf16.msra.mxu0 %v1264_v6  ;;  %v1273_v15 = vld [vmem:[%s1379_s20 + $0x98] sm:$0xff]   ;;  %v1277_v19 = vld [vmem:[%s1379_s20 + $0xa0] sm:$0xff]   ;;  %v1281_v23 = vld [vmem:[%s1379_s20 + $0xa8] sm:$0xff]  }
  0x18   : > { %1187 = vmatpush3.bf16.msra.mxu1 %v1265_v7  ;;  %1166 = vmatprep.subr.bf16.mxu0 %v1266_v8  ;;  %v1282_v24 = vld [vmem:[%s1379_s20 + $0x70] sm:$0xff]   ;;  %v1286_v28 = vld [vmem:[%s1379_s20 + $0x78] sm:$0xff]   ;;  %v245_v32 = vld [vmem:[%s1415_s24] sm:$0xff] }
  0x19   : > { %1188 = vmatprep.subr.bf16.mxu1 %v1267_v9  ;;  %v1283_v25 = vld [vmem:[%s1379_s20 + $0xf0] sm:$0xff]   ;;  %v1287_v29 = vld [vmem:[%s1379_s20 + $0xf8] sm:$0xff]   ;;  %v246_v33 = vld [vmem:[%s1415_s24 + $0x8] sm:$0xff]  ;;  %v1086_v34 = vcombine.low %v245_v32, %v245_v32  ;;  %v1087_v35 = vcombine.high %v245_v32, %v245_v32 }
  0x1a   : > { %v1284_v26 = vld [vmem:[%s1379_s20 + $0x30] sm:$0xff]   ;;  %v1288_v30 = vld [vmem:[%s1379_s20 + $0x38] sm:$0xff]   ;;  %v1088_v36 = vcombine.low %v246_v33, %v246_v33  ;;  %v1089_v37 = vcombine.high %v246_v33, %v246_v33  ;;  %v1294_v38 = vld [vmem:[%s1379_s20 + $0x140] sm:$0xff]  }
  0x1b   : > { %1167 = vmatpush3.bf16.msra.mxu0 %v1268_v10  ;;  %v1285_v27 = vld [vmem:[%s1379_s20 + $0xb0] sm:$0xff]   ;;  %v1289_v31 = vld [vmem:[%s1379_s20 + $0xb8] sm:$0xff]   ;;  %v1295_v39 = vld [vmem:[%s1379_s20 + $0x1c0] sm:$0xff]   ;;  %823 = vmatprep.mubr.bf16.mxu0 %v1087_v35 }
  0x1c   : > { %1189 = vmatpush3.bf16.msra.mxu1 %v1269_v11  ;;  %1168 = vmatprep.subr.bf16.mxu0 %v1270_v12  ;;  %v1296_v40 = vld [vmem:[%s1379_s20 + $0x100] sm:$0xff]   ;;  %v1298_v42 = vld [vmem:[%s1379_s20 + $0x148] sm:$0xff]   ;;  %v1302_v46 = vld [vmem:[%s1379_s20 + $0x150] sm:$0xff]  }
  0x1d   : > { %1190 = vmatprep.subr.bf16.mxu1 %v1271_v13  ;;  %863 = vmatprep.mubr.bf16.mxu1 %v1089_v37  ;;  %v1297_v41 = vld [vmem:[%s1379_s20 + $0x180] sm:$0xff]   ;;  %v1299_v43 = vld [vmem:[%s1379_s20 + $0x1c8] sm:$0xff]   ;;  %v1303_v47 = vld [vmem:[%s1379_s20 + $0x1d0] sm:$0xff]  }
  0x1e   : > { %v1300_v44 = vld [vmem:[%s1379_s20 + $0x108] sm:$0xff]   ;;  %v1304_v48 = vld [vmem:[%s1379_s20 + $0x110] sm:$0xff]   ;;  %v1306_v50 = vld [vmem:[%s1379_s20 + $0x158] sm:$0xff]  }
  0x1f   : > { %1169 = vmatpush3.bf16.msra.mxu0 %v1272_v14  ;;  %v1301_v45 = vld [vmem:[%s1379_s20 + $0x188] sm:$0xff]   ;;  %v1305_v49 = vld [vmem:[%s1379_s20 + $0x190] sm:$0xff]   ;;  %v1307_v51 = vld [vmem:[%s1379_s20 + $0x1d8] sm:$0xff]  }
  0x20   : > { %1191 = vmatpush3.bf16.msra.mxu1 %v1273_v15  ;;  %1170 = vmatprep.subr.bf16.mxu0 %v1274_v16  ;;  %v1308_v52 = vld [vmem:[%s1379_s20 + $0x118] sm:$0xff]   ;;  %v1310_v54 = vld [vmem:[%s1379_s20 + $0x160] sm:$0xff]   ;;  %v1314_v58 = vld [vmem:[%s1379_s20 + $0x168] sm:$0xff]  }
  0x21   : > { %1192 = vmatprep.subr.bf16.mxu1 %v1275_v17  ;;  %v1309_v53 = vld [vmem:[%s1379_s20 + $0x198] sm:$0xff]   ;;  %v1311_v55 = vld [vmem:[%s1379_s20 + $0x1e0] sm:$0xff]   ;;  %v1315_v59 = vld [vmem:[%s1379_s20 + $0x1e8] sm:$0xff]  }
  0x22   : > { %v1312_v56 = vld [vmem:[%s1379_s20 + $0x120] sm:$0xff]   ;;  %v1316_v60 = vld [vmem:[%s1379_s20 + $0x128] sm:$0xff]   ;;  %v1318_v62 = vld [vmem:[%s1379_s20 + $0x170] sm:$0xff]  }
  0x23   : > { %1171 = vmatpush3.bf16.msra.mxu0 %v1276_v18  ;;  %v1313_v57 = vld [vmem:[%s1379_s20 + $0x1a0] sm:$0xff]   ;;  %v1317_v61 = vld [vmem:[%s1379_s20 + $0x1a8] sm:$0xff]   ;;  %v1319_v63 = vld [vmem:[%s1379_s20 + $0x1f0] sm:$0xff]  }
  0x24   : > { %1193 = vmatpush3.bf16.msra.mxu1 %v1277_v19  ;;  %1172 = vmatprep.subr.bf16.mxu0 %v1278_v20  ;;  %v1320_v0 = vld [vmem:[%s1379_s20 + $0x130] sm:$0xff]   ;;  %v1322_v2 = vld [vmem:[%s1379_s20 + $0x178] sm:$0xff]  }
  0x25   : > { %1194 = vmatprep.subr.bf16.mxu1 %v1279_v21  ;;  %v1321_v1 = vld [vmem:[%s1379_s20 + $0x1b0] sm:$0xff]   ;;  %v1323_v3 = vld [vmem:[%s1379_s20 + $0x1f8] sm:$0xff]  }
  0x26   : > { %v1324_v4 = vld [vmem:[%s1379_s20 + $0x138] sm:$0xff]   ;;  %v247_v6 = vld [vmem:[%s1415_s24 + $0x10] sm:$0xff] }
  0x27   : > { %1173 = vmatpush3.bf16.msra.mxu0 %v1280_v22  ;;  %v1325_v5 = vld [vmem:[%s1379_s20 + $0x1b8] sm:$0xff]   ;;  %v1090_v7 = vcombine.low %v247_v6, %v247_v6  ;;  %v1091_v8 = vcombine.high %v247_v6, %v247_v6 }
  0x28   : > { %1195 = vmatpush3.bf16.msra.mxu1 %v1281_v23  ;;  %1174 = vmatprep.subr.bf16.mxu0 %v1282_v24  ;;  %v248_v9 = vld [vmem:[%s1415_s24 + $0x18] sm:$0xff] }
  0x29   : > { %1196 = vmatprep.subr.bf16.mxu1 %v1283_v25  ;;  %v1092_v10 = vcombine.low %v248_v9, %v248_v9  ;;  %v1093_v11 = vcombine.high %v248_v9, %v248_v9 }
  0x2b   : > { %1175 = vmatpush3.bf16.msra.mxu0 %v1284_v26 }
  0x2c   : > { %1197 = vmatpush3.bf16.msra.mxu1 %v1285_v27  ;;  %1176 = vmatprep.subr.bf16.mxu0 %v1286_v28 }
  0x2d   : > { %1198 = vmatprep.subr.bf16.mxu1 %v1287_v29 }
  0x2f   : > { %1177 = vmatpush3.bf16.msra.mxu0 %v1288_v30 }
  0x30   : > { %1199 = vmatpush3.bf16.msra.mxu1 %v1289_v31  ;;  %1206 = vmatprep.subr.bf16.mxu0 %v1294_v38 }
  0x31   : > { %1228 = vmatprep.subr.bf16.mxu1 %v1295_v39 }
  0x32   : > { %824 = vmatmul.mubr.bf16.vlgmr.msra.gmra.mrb[0].mxu0 %v1086_v34 }
  0x33   : > { %864 = vmatmul.mubr.bf16.vlgmr.msra.gmra.mrb[0].mxu1 %v1088_v36  ;;  %1207 = vmatpush3.bf16.msra.mxu0 %v1296_v40 }
  0x34   : > { %1229 = vmatpush3.bf16.msra.mxu1 %v1297_v41  ;;  %1208 = vmatprep.subr.bf16.mxu0 %v1298_v42 }
  0x35   : > { %1230 = vmatprep.subr.bf16.mxu1 %v1299_v43  ;;  %903 = vmatprep.mubr.bf16.mxu0 %v1091_v8 }
  0x36   : > { %943 = vmatprep.mubr.bf16.mxu1 %v1093_v11 }
  0x37   : > { %1209 = vmatpush3.bf16.msra.mxu0 %v1300_v44 }
  0x38   : > { %1231 = vmatpush3.bf16.msra.mxu1 %v1301_v45  ;;  %1210 = vmatprep.subr.bf16.mxu0 %v1302_v46 }
  0x39   : > { %1232 = vmatprep.subr.bf16.mxu1 %v1303_v47 }
  0x3b   : > { %1211 = vmatpush3.bf16.msra.mxu0 %v1304_v48 }
  0x3c   : > { %1233 = vmatpush3.bf16.msra.mxu1 %v1305_v49  ;;  %1212 = vmatprep.subr.bf16.mxu0 %v1306_v50 }
  0x3d   : > { %1234 = vmatprep.subr.bf16.mxu1 %v1307_v51 }
  0x3f   : > { %1213 = vmatpush3.bf16.msra.mxu0 %v1308_v52 }
  0x40   : > { %1235 = vmatpush3.bf16.msra.mxu1 %v1309_v53  ;;  %1214 = vmatprep.subr.bf16.mxu0 %v1310_v54 }
  0x41   : > { %1236 = vmatprep.subr.bf16.mxu1 %v1311_v55  ;;  %v978_v55 = vlaneseq }
  0x43   : > { %1215 = vmatpush3.bf16.msra.mxu0 %v1312_v56  ;;  %v979_v56 = vshrl.u32 %v978_v55, 7 }
  0x44   : > { %1237 = vmatpush3.bf16.msra.mxu1 %v1313_v57  ;;  %1216 = vmatprep.subr.bf16.mxu0 %v1314_v58  ;;  %v377_v57 = vld [vmem:[%s236_s27] sm:$0x1] }
  0x45   : > { %1238 = vmatprep.subr.bf16.mxu1 %v1315_v59  ;;  %v980_v58 = vsub.s32 0, %v979_v56 }
  0x47   : > { %1217 = vmatpush3.bf16.msra.mxu0 %v1316_v60 }
  0x48   : > { %1239 = vmatpush3.bf16.msra.mxu1 %v1317_v61  ;;  %1218 = vmatprep.subr.bf16.mxu0 %v1318_v62  ;;  %v378_v61 = vld [vmem:[%s239_s30] sm:$0x1] }
  0x49   : > { %1240 = vmatprep.subr.bf16.mxu1 %v1319_v63 }
  0x4b   : > { %1219 = vmatpush3.bf16.msra.mxu0 %v1320_v0 }
  0x4c   : > { %1241 = vmatpush3.bf16.msra.mxu1 %v1321_v1  ;;  %1220 = vmatprep.subr.bf16.mxu0 %v1322_v2 }
  0x4d   : > { %1242 = vmatprep.subr.bf16.mxu1 %v1323_v3 }
  0x4f   : > { %1221 = vmatpush3.bf16.msra.mxu0 %v1324_v4 }
  0x50   : > { %1243 = vmatpush3.bf16.msra.mxu1 %v1325_v5 }
  0x52   : > { %904 = vmatmul.mubr.bf16.vlgmr.msra.gmra.mrb[4].mxu0 %v1090_v7 }
  0x53   : > { %944 = vmatmul.mubr.bf16.vlgmr.msra.gmra.mrb[4].mxu1 %v1092_v10 }
 0x105   : > { %v1178_v12 = vpop.f32.mrb[0].mxu0 }
 0x106   : > { %v1200_v13 = vpop.f32.mrb[0].mxu1  ;;  %v1179_v14 = vpop.f32.mrb[1].mxu0 }
 0x107   : > { %v1201_v15 = vpop.f32.mrb[1].mxu1  ;;  %v1180_v16 = vadd.f32 %v1179_v14, %v1178_v12  ;;  %v1181_v18 = vpop.f32.mrb[2].mxu0 }
 0x108   : > { %v1202_v17 = vadd.f32 %v1201_v15, %v1200_v13  ;;  %v1203_v19 = vpop.f32.mrb[2].mxu1  ;;  %v1182_v20 = vpop.f32.mrb[3].mxu0 }
 0x109   : > { %v1204_v21 = vpop.f32.mrb[3].mxu1 }
 0x10a   : > { %v866_v22 = vadd.f32 %v1202_v17, %v1180_v16 }
 0x125   : > { %v1222_v23 = vpop.f32.mrb[4].mxu0 }
 0x126   : > { %v1244_v24 = vpop.f32.mrb[4].mxu1  ;;  %v1223_v25 = vpop.f32.mrb[5].mxu0 }
 0x127   : > { %v1245_v26 = vpop.f32.mrb[5].mxu1  ;;  %v1224_v27 = vadd.f32 %v1223_v25, %v1222_v23  ;;  %v1225_v29 = vpop.f32.mrb[6].mxu0 }
 0x128   : > { %v1246_v28 = vadd.f32 %v1245_v26, %v1244_v24  ;;  %v1247_v30 = vpop.f32.mrb[6].mxu1  ;;  %v1226_v31 = vpop.f32.mrb[7].mxu0 }
 0x129   : > { %v1248_v32 = vpop.f32.mrb[7].mxu1  ;;  %v906_v33 = vadd.f32 %v1224_v27, %v866_v22 }
 0x12b   : > { %v946_v34 = vadd.f32 %v1246_v28, %v906_v33 }
 0x12d   : > { %v952_v35 = vsel %vm951_vm0, %v946_v34, 0.0  ;;  %v961_v36 = vmul.f32 %v946_v34, %v946_v34 }
 0x12e   : > { %v953_v37 = vrot.slane %v952_v35, 4 }
 0x12f   : > { %v962_v38 = vsel %vm951_vm0, %v961_v36, 0.0 }
 0x130   : > { %v954_v39 = vadd.f32 %v953_v37, %v952_v35  ;;  %v963_v40 = vrot.slane %v962_v38, 4 }
 0x132   : > { %v955_v41 = vrot.slane %v954_v39, 2  ;;  %v964_v42 = vadd.f32 %v963_v40, %v962_v38 }
 0x134   : > { %v956_v43 = vadd.f32 %v955_v41, %v954_v39  ;;  %v965_v44 = vrot.slane %v964_v42, 2 }
 0x136   : > { %v957_v45 = vrot.slane %v956_v43, 1  ;;  %v966_v46 = vadd.f32 %v965_v44, %v964_v42 }
 0x138   : > { %v958_v47 = vadd.f32 %v957_v45, %v956_v43  ;;  %v967_v48 = vrot.slane %v966_v46, 1 }
 0x13a   : > { %v960_v49 = vmul.f32 0.125, %v958_v47  ;;  %v968_v50 = vadd.f32 %v967_v48, %v966_v46 }
 0x13c   : > { %v969_v51 = vmul.f32 0.125, %v968_v50  ;;  %v970_v52 = vmul.f32 %v960_v49, %v960_v49 }
 0x13e   : > { %v971_v53 = vsub.f32 %v969_v51, %v970_v52 }
 0x140   : > { %v972_v54 = vadd.f32 1e-05, %v971_v53 }
 0x142   : > { %1330 = vrsqrt.f32 %v972_v54 }
 0x14c   : > { %v1331_v59 = vpop.eup %1330 }
 0x14d   : > { %v974_v60 = vmul.f32 %v1331_v59, %v377_v57 }
 0x14f   : > { %v975_v62 = vmul.f32 %v974_v60, %v960_v49  ;;  %v981_v63 = vrot.slane %v974_v60, %v980_v58 }
 0x151   : > { %v976_v0 = vsub.f32 %v378_v61, %v975_v62  ;;  %v983_v1 = vmul.f32 %v981_v63, %v946_v34 }
 0x153   : > { %v988_v2 = vrot.slane %v976_v0, %v980_v58 }
 0x155   : > { %v990_v3 = vadd.f32 %v988_v2, %v983_v1 }
 0x157   : > { %v991_v4 = vmax.f32 %v990_v3, 0.0 }
 0x159   : > { %992 = vst.msk [vmem:[%s243_s8] sm:$0xff] %vm951_vm0, %v991_v4 }
 0x15a PF: > { %s14_s15 = sadd.s32 1, %s1338_s15  }
 0x15b   : > { %p11_p4 = scmp.ge.s32.totalorder %s14_s15, 4  }
 0x15d   :  { %13 = sbr.rel (!%p11_p4) target bundleno = 1 (0x1), region = 75 }

</bundles_post_ra>
